<compile_context>
chip_gen: v7x
topology: tpu7x:2x2x1
jax: 0.10.0
libtpu: 0.0.40
codegen_flags: <defaults>
</compile_context>

<pallas_src>
import functools

import jax
import jax.numpy as jnp
from jax import lax
from jax.experimental import pallas as pl
from jax.experimental.pallas import tpu as pltpu


# ----------------------------- kernels ------------------------------------


def _kernel_tiled_bn_relu(x_ref, w_ref, s_ref, b_ref, o_ref, *, precision):
    # x_ref: (C_in, t_hw), w_ref: (C_out, C_in), s_ref/b_ref: (C_out, 1) f32.
    y = jnp.dot(w_ref[...], x_ref[...],
                preferred_element_type=jnp.float32, precision=precision)
    o_ref[...] = jnp.maximum(y * s_ref[...] + b_ref[...], 0.0).astype(o_ref.dtype)


def _kernel_tiled_plain(x_ref, w_ref, o_ref, *, precision):
    o_ref[...] = jnp.dot(
        w_ref[...], x_ref[...],
        preferred_element_type=jnp.float32, precision=precision
    ).astype(o_ref.dtype)


def _kernel_batched_bn_relu(x_ref, w_ref, s_ref, b_ref, o_ref, *,
                            batch, c_in, c_out, precision):
    # x_ref: (batch*C_in, HW) contiguous slab; one small dot per fused image.
    w = w_ref[...]
    s = s_ref[...]
    b = b_ref[...]
    for i in range(batch):  # static unroll (batch is a small Python int)
        xi = x_ref[pl.ds(i * c_in, c_in), :]
        y = jnp.dot(w, xi, preferred_element_type=jnp.float32,
                    precision=precision)
        o_ref[pl.ds(i * c_out, c_out), :] = jnp.maximum(
            y * s + b, 0.0).astype(o_ref.dtype)


def _kernel_batched_plain(x_ref, w_ref, o_ref, *, batch, c_in, c_out, precision):
    w = w_ref[...]
    for i in range(batch):
        xi = x_ref[pl.ds(i * c_in, c_in), :]
        o_ref[pl.ds(i * c_out, c_out), :] = jnp.dot(
            w, xi, preferred_element_type=jnp.float32,
            precision=precision).astype(o_ref.dtype)


# ----------------------------- heuristics ----------------------------------


def _round_up(x, m):
    return -(-x // m) * m


def _vmem_capacity_bytes():
    """Physical VMEM of the current part; conservative fallback = 64 MiB (v7x)."""
    try:
        cap = int(getattr(pltpu.get_tpu_info(), "vmem_capacity_bytes", 0) or 0)
        if cap > 0:
            return cap
    except Exception:
        pass
    return 64 << 20


def _pick_hw_tile(hw, c_in, itemsize, buf_budget, max_lane_tile=16384):
    """Lane (spatial) tile: multiple of 128, large enough to put ~>=1-2 MiB in
    each pipelined buffer, and BALANCED (equal-sized blocks, no nearly-empty
    ragged tail)."""
    if hw <= 256:
        return hw  # full extent is always a legal block shape
    by_budget = max(128, (buf_budget // (c_in * itemsize)) // 128 * 128)
    t_max = min(by_budget, max_lane_tile)
    n_blocks = -(-hw // t_max)
    if n_blocks <= 1:
        return hw
    return _round_up(-(-hw // n_blocks), 128)


def _pick_batch_fuse(n, c_in, hw, itemsize, buf_budget):
    """Largest divisor of n whose fused (B*C_in, HW) slab fits the per-buffer
    budget while keeping >=2 grid steps when n allows (v7x has 2 TCs)."""
    best = 1
    for b in range(1, n + 1):
        if n % b:
            continue
        if b * c_in * hw * itemsize > buf_budget:
            break
        if n >= 2 and n // b < 2:
            continue
        best = b
    return best


# ----------------------------- wrapper -------------------------------------


def reducer_forward(x_nchw, weight, gamma=None, beta=None, running_mean=None,
                    running_var=None, *, bn_relu=True, eps=1e-5,
                    out_dtype=None):
    """x_nchw: (N, C_in, H, W); weight: (C_out, C_in, 1, 1) as in nn.Conv2d.

    Note: the kernel is HBM-bandwidth bound; running the surrounding model in
    bf16 roughly halves its wall time (f32 path kept fully accurate via
    Precision.HIGHEST).
    """
    N, C_in, H, W = x_nchw.shape
    C_out = weight.shape[0]
    HW = H * W
    out_dtype = x_nchw.dtype if out_dtype is None else out_dtype
    in_item = jnp.dtype(x_nchw.dtype).itemsize
    out_item = jnp.dtype(out_dtype).itemsize

    # f32 inputs: full-precision MXU (bf16x3) -- extra passes hide under DMA.
    precision = (lax.Precision.HIGHEST if x_nchw.dtype == jnp.float32
                 else lax.Precision.DEFAULT)

    # 1x1 conv weight as a (C_out, C_in) matrix in the activation dtype.
    w_mat = weight.reshape(C_out, C_in).astype(x_nchw.dtype)

    scale = bias = None
    if bn_relu:
        scale = (gamma.astype(jnp.float32) /
                 jnp.sqrt(running_var.astype(jnp.float32) + eps)).reshape(C_out, 1)
        bias = (beta.astype(jnp.float32).reshape(C_out, 1)
                - running_mean.astype(jnp.float32).reshape(C_out, 1) * scale)

    # Generation-aware budgets (v5e/v6e: 128 MiB VMEM, v7x: 64 MiB).
    vmem_cap = _vmem_capacity_bytes()
    buf_budget = max(2 << 20, vmem_cap // 16)   # per pipelined x buffer

    use_batched = (HW <= 512 and C_in % 8 == 0 and C_out % 8 == 0)

    if use_batched:
        # Small spatial extent: fuse B images per grid step; each DMA is one
        # contiguous (B*C_in, HW) slab instead of C_in short strided rows.
        B = _pick_batch_fuse(N, C_in, HW, in_item, buf_budget)
        x2 = x_nchw.reshape(N * C_in, HW)            # free view, no transpose
        grid = (N // B,)
        x_spec = pl.BlockSpec((B * C_in, HW), lambda g: (g, 0))
        w_spec = pl.BlockSpec((C_out, C_in), lambda g: (0, 0))
        sb_spec = pl.BlockSpec((C_out, 1), lambda g: (0, 0))
        o_spec = pl.BlockSpec((B * C_out, HW), lambda g: (g, 0))
        out_shape = jax.ShapeDtypeStruct((N * C_out, HW), out_dtype)
        est = (2 * B * C_in * HW * in_item + 2 * B * C_out * HW * out_item
               + 2 * C_out * C_in * in_item + 4 * C_out * 4
               + C_out * HW * 4)
        sem = ("parallel",)
        if bn_relu:
            kernel = functools.partial(_kernel_batched_bn_relu, batch=B,
                                       c_in=C_in, c_out=C_out,
                                       precision=precision)
            in_specs = [x_spec, w_spec, sb_spec, sb_spec]
            args = (x2, w_mat, scale, bias)
        else:
            kernel = functools.partial(_kernel_batched_plain, batch=B,
                                       c_in=C_in, c_out=C_out,
                                       precision=precision)
            in_specs = [x_spec, w_spec]
            args = (x2, w_mat)
    else:
        # Large spatial extent: grid over (batch, lane-dense spatial tiles).
        x3 = x_nchw.reshape(N, C_in, HW)             # free view, no transpose
        t_hw = _pick_hw_tile(HW, C_in, in_item, buf_budget)
        # v7x has 2 TensorCores: guarantee >=2 parallel grid steps when N == 1.
        if N == 1 and -(-HW // t_hw) == 1 and HW >= 256:
            t_hw = _round_up(-(-HW // 2), 128)
        grid = (N, -(-HW // t_hw))
        x_spec = pl.BlockSpec((None, C_in, t_hw), lambda n, j: (n, 0, j))
        w_spec = pl.BlockSpec((C_out, C_in), lambda n, j: (0, 0))
        sb_spec = pl.BlockSpec((C_out, 1), lambda n, j: (0, 0))
        o_spec = pl.BlockSpec((None, C_out, t_hw), lambda n, j: (n, 0, j))
        out_shape = jax.ShapeDtypeStruct((N, C_out, HW), out_dtype)
        est = (2 * C_in * t_hw * in_item + 2 * C_out * t_hw * out_item
               + 2 * C_out * C_in * in_item + 4 * C_out * 4
               + C_out * t_hw * 4)
        sem = ("parallel", "parallel")
        if bn_relu:
            kernel = functools.partial(_kernel_tiled_bn_relu,
                                       precision=precision)
            in_specs = [x_spec, w_spec, sb_spec, sb_spec]
            args = (x3, w_mat, scale, bias)
        else:
            kernel = functools.partial(_kernel_tiled_plain,
                                       precision=precision)
            in_specs = [x_spec, w_spec]
            args = (x3, w_mat)

    # Scoped VMEM: >= 32 MiB default, capped at 70% of physical capacity so
    # Mosaic scratch / semaphores keep headroom on v7x while v5e/v6e can grow.
    vmem_limit = int(min(max(32 << 20, 2 * est), int(0.70 * vmem_cap)))

    out = pl.pallas_call(
        kernel,
        out_shape=out_shape,
        grid_spec=pltpu.PrefetchScalarGridSpec(
            num_scalar_prefetch=0,
            grid=grid,
            in_specs=in_specs,
            out_specs=o_spec),
        compiler_params=pltpu.CompilerParams(
            dimension_semantics=sem,
            vmem_limit_bytes=vmem_limit),
    )(*args)

    return out.reshape(N, C_out, H, W)


# ----------------------------- reference -----------------------------------


def reference_forward(x_nchw, weight, gamma=None, beta=None, running_mean=None,
                      running_var=None, *, bn_relu=True, eps=1e-5):
    # Pure-JAX reference (same eval-mode BN semantics), full f32 precision.
    C_out, C_in = weight.shape[0], weight.shape[1]
    w_mat = weight.reshape(C_out, C_in)
    y = jnp.einsum('nchw,oc->nohw', x_nchw.astype(jnp.float32),
                   w_mat.astype(jnp.float32),
                   precision=lax.Precision.HIGHEST)
    if bn_relu:
        scale = (gamma / jnp.sqrt(running_var + eps)).reshape(1, C_out, 1, 1)
        b = (beta - running_mean * gamma /
             jnp.sqrt(running_var + eps)).reshape(1, C_out, 1, 1)
        y = jnp.maximum(y * scale + b, 0.0)
    return y.astype(x_nchw.dtype)


# ----------------------------- demo / check --------------------------------


if __name__ == "__main__":
    key = jax.random.PRNGKey(0)
    k_x, k_w, k_g, k_b, k_m, k_v, k_x2, k_w2 = jax.random.split(key, 8)

    # Small shapes consistent with the module (in_channels -> reduce).
    N, C_in, H, W = 2, 64, 16, 16       # HW=256 -> batched (small-HW) path
    C_out = 32

    x = jax.random.normal(k_x, (N, C_in, H, W), dtype=jnp.float32)
    weight = jax.random.normal(k_w, (C_out, C_in, 1, 1), dtype=jnp.float32) * 0.05
    gamma = jax.random.normal(k_g, (C_out,), dtype=jnp.float32) * 0.1 + 1.0
    beta = jax.random.normal(k_b, (C_out,), dtype=jnp.float32) * 0.1
    running_mean = jax.random.normal(k_m, (C_out,), dtype=jnp.float32) * 0.1
    running_var = jax.nn.softplus(
        jax.random.normal(k_v, (C_out,), dtype=jnp.float32)) + 0.5

    # 1) f32, bn_relu=True (batched small-HW path)
    out = jax.block_until_ready(
        reducer_forward(x, weight, gamma, beta, running_mean, running_var,
                        bn_relu=True))
    ref = reference_forward(x, weight, gamma, beta, running_mean, running_var,
                            bn_relu=True)
    assert out.shape == (N, C_out, H, W), out.shape
    assert jnp.allclose(out, ref, atol=2e-4, rtol=2e-4), "f32 bn_relu mismatch"

    # 2) conv-only path (bn_relu=False)
    out_nb = jax.block_until_ready(reducer_forward(x, weight, bn_relu=False))
    ref_nb = reference_forward(x, weight, bn_relu=False)
    assert jnp.allclose(out_nb, ref_nb, atol=2e-4, rtol=2e-4), "plain mismatch"

    # 3) bf16 activations (intended usage in a bf16 model; halves HBM traffic)
    x_bf16 = x.astype(jnp.bfloat16)
    out_bf = jax.block_until_ready(
        reducer_forward(x_bf16, weight, gamma, beta, running_mean, running_var,
                        bn_relu=True))
    ref_bf = reference_forward(x_bf16.astype(jnp.float32), weight, gamma, beta,
                               running_mean, running_var, bn_relu=True)
    max_err = jnp.max(jnp.abs(out_bf.astype(jnp.float32) - ref_bf))
    assert max_err < 3e-2, f"bf16 mismatch: {max_err}"

    # 4) Larger, ragged spatial extent with N=1 -> tiled path, balanced blocks
    #    and forced 2 parallel grid steps (v7x 2-TC balance).
    N2, C_in2, H2, W2 = 1, 48, 30, 30   # HW=900
    x2 = jax.random.normal(k_x2, (N2, C_in2, H2, W2), dtype=jnp.float32)
    w2 = jax.random.normal(k_w2, (C_out, C_in2, 1, 1), dtype=jnp.float32) * 0.05
    out2 = jax.block_until_ready(
        reducer_forward(x2, w2, gamma, beta, running_mean, running_var,
                        bn_relu=True))
    ref2 = reference_forward(x2, w2, gamma, beta, running_mean, running_var,
                             bn_relu=True)
    assert out2.shape == (N2, C_out, H2, W2), out2.shape
    assert jnp.allclose(out2, ref2, atol=2e-4, rtol=2e-4), "tiled path mismatch"

    print("KERNEL_OK")
</pallas_src>

<mosaic_0001>
module attributes {stable_mosaic.version = 11 : i64} {
  func.func @_kernel_batched_bn_relu(%arg0: i32, %arg1: memref<64x256xf32, #tpu.memory_space<vmem>>, %arg2: memref<32x64xf32, #tpu.memory_space<vmem>>, %arg3: memref<32x1xf32, #tpu.memory_space<vmem>>, %arg4: memref<32x1xf32, #tpu.memory_space<vmem>>, %arg5: memref<32x256xf32, #tpu.memory_space<vmem>>) attributes {dimension_semantics = [#tpu.dimension_semantics<parallel>], iteration_bounds = array<i64: 2>, scalar_prefetch = 0 : i64, scratch_operands = 0 : i64, tpu.core_type = #tpu.core_type<tc>, window_params = [{transform_indices = @transform_0, window_bounds = array<i64: 64, 256>}, {pipeline_mode = #tpu.pipeline_mode<synchronous>, transform_indices = @transform_1, window_bounds = array<i64: 32, 64>}, {pipeline_mode = #tpu.pipeline_mode<synchronous>, transform_indices = @transform_2, window_bounds = array<i64: 32, 1>}, {pipeline_mode = #tpu.pipeline_mode<synchronous>, transform_indices = @transform_3, window_bounds = array<i64: 32, 1>}, {transform_indices = @transform_4, window_bounds = array<i64: 32, 256>}]} {
    %c0 = arith.constant 0 : index
    %c0_0 = arith.constant 0 : index
    %0 = vector.load %arg2[%c0, %c0_0] : memref<32x64xf32, #tpu.memory_space<vmem>>, vector<32x64xf32>
    %c0_1 = arith.constant 0 : index
    %c0_2 = arith.constant 0 : index
    %1 = vector.load %arg3[%c0_1, %c0_2] : memref<32x1xf32, #tpu.memory_space<vmem>>, vector<32x1xf32>
    %c0_3 = arith.constant 0 : index
    %c0_4 = arith.constant 0 : index
    %2 = vector.load %arg4[%c0_3, %c0_4] : memref<32x1xf32, #tpu.memory_space<vmem>>, vector<32x1xf32>
    %c0_5 = arith.constant 0 : index
    %c0_6 = arith.constant 0 : index
    %3 = vector.load %arg1[%c0_5, %c0_6] : memref<64x256xf32, #tpu.memory_space<vmem>>, vector<64x256xf32>
    %cst = arith.constant dense<0.000000e+00> : vector<32x256xf32>
    %4 = tpu.matmul %0, %3, %cst {dimension_numbers = #tpu.dot_dimension_numbers<[1], [0], [0], [1], [0, 0, 1, 1], [], []>, precision = #tpu.contract_precision<fp32>} : vector<32x64xf32>, vector<64x256xf32>, vector<32x256xf32> -> vector<32x256xf32>
    %5 = vector.broadcast %1 : vector<32x1xf32> to vector<32x256xf32>
    %6 = arith.mulf %4, %5 : vector<32x256xf32>
    %7 = vector.broadcast %2 : vector<32x1xf32> to vector<32x256xf32>
    %8 = arith.addf %6, %7 : vector<32x256xf32>
    %cst_7 = arith.constant 0.000000e+00 : f32
    %9 = vector.broadcast %cst_7 : f32 to vector<32x256xf32>
    %10 = arith.maximumf %8, %9 : vector<32x256xf32>
    %c0_8 = arith.constant 0 : index
    %c0_9 = arith.constant 0 : index
    %11 = vector.load %arg5[%c0_8, %c0_9] : memref<32x256xf32, #tpu.memory_space<vmem>>, vector<32x256xf32>
    tpu.vector_store %arg5[%c0_8, %c0_9], %10 {strides = array<i32>} : memref<32x256xf32, #tpu.memory_space<vmem>>, vector<32x256xf32>,
    return
  }
  func.func @transform_0(%arg0: i32) -> (i32, i32) {
    %c0_i32 = arith.constant 0 : i32
    %c0_i32_0 = arith.constant 0 : i32
    return %arg0, %c0_i32 : i32, i32
  }
  func.func @transform_1(%arg0: i32) -> (i32, i32) {
    %c0_i32 = arith.constant 0 : i32
    %c0_i32_0 = arith.constant 0 : i32
    %c0_i32_1 = arith.constant 0 : i32
    return %c0_i32, %c0_i32_0 : i32, i32
  }
  func.func @transform_2(%arg0: i32) -> (i32, i32) {
    %c0_i32 = arith.constant 0 : i32
    %c0_i32_0 = arith.constant 0 : i32
    %c0_i32_1 = arith.constant 0 : i32
    return %c0_i32, %c0_i32_0 : i32, i32
  }
  func.func @transform_3(%arg0: i32) -> (i32, i32) {
    %c0_i32 = arith.constant 0 : i32
    %c0_i32_0 = arith.constant 0 : i32
    %c0_i32_1 = arith.constant 0 : i32
    return %c0_i32, %c0_i32_0 : i32, i32
  }
  func.func @transform_4(%arg0: i32) -> (i32, i32) {
    %c0_i32 = arith.constant 0 : i32
    %c0_i32_0 = arith.constant 0 : i32
    return %arg0, %c0_i32 : i32, i32
  }
}

</mosaic_0001>

<bundles_post_ra>
// kernel: tpu_custom_call.1
= control target key start
LH: loop header
LB: loop body
LE: loop exit
PB: predicated region body
PF: predicated region fallthrough
CT: control target
= control target key end

     0   :  { %9 = vsyncpa [#allocation3], 0  ;;  %s1975_s0 = inlined_call_operand.hbm [shape: f32[128,256], index: 0, kind: input, shape index: {}]   ;;  %s1976_s1 = inlined_call_operand.vmem [shape: f32[32,64], index: 1, kind: input, shape index: {}]   ;;  %s1977_s2 = inlined_call_operand.vmem [shape: f32[32,1], index: 2, kind: input, shape index: {}]   ;;  %s1978_s3 = inlined_call_operand.vmem [shape: f32[32,1], index: 3, kind: input, shape index: {}]   ;;  %s1979_s4 = inlined_call_operand.hbm [shape: f32[64,256], index: 4, kind: output, shape index: {}]  }
   0x1   :  { %11 = vsyncpa [#allocation3 + $0x1], 0 }
   0x2   :  { %12 = vsyncpa [#allocation4], 0 }
   0x3   :  { %14 = vsyncpa [#allocation4 + $0x1], 0  ;;  %s1555_s15 = smov 0   ;;  %s1557_s16 = smov 0  }
   0x4   :  { %s1559_s17 = smov 0   ;;  %s1561_s18 = smov 0  }
   0x5 LB: > { %s1576_s19 = sadd.s32 4294967295, %s1520_s18   ;;  %s1214_s20 = sadd.s32 4294967294, %s1520_s18   ;;  %s1520_s18 = sphi %s1561_s18, %s1992_s18   ;;  %s1516_s17 = sphi %s1559_s17, %s1991_s17   ;;  %s1512_s16 = sphi %s1557_s16, %s1990_s16   ;;  %s1508_s15 = sphi %s1555_s15, %s1989_s15  }
   0x6   : > { %s1580_s21 = sadd.s32 1, %s1520_s18   ;;  %s27_s22 = sadd.s32 1, %s1516_s17 }
   0x7   : > { %s24_s23 = ssub.s32 %s1520_s18, %s1580_s21  ;;  %p34_p0 = scmp.ne.s32.totalorder %s1516_s17, %s1512_s16 }
   0x8   : > { %p25_p1 = scmp.eq.s32.totalorder %s24_s23, 0  ;;  %p35_p2 = scmp.eq.s32.totalorder %s1520_s18, 0 }
   0x9   : > { %p40_p3 = scmp.ne.s32.totalorder %s1512_s16, %s1508_s15  ;;  %p41_p4 = scmp.eq.s32.totalorder %s1576_s19, 0 }
   0xa   : > { %s1592_s24 = scalar_select %p25_p1, %s1516_s17, %s27_s22  }
   0xb   : > { %p1594_p5 = por %p35_p2, %p34_p0  ;;  %p1598_p6 = por %p41_p4, %p40_p3 }
   0xc   : > { %p127_p7 = scmp.eq.s32.totalorder %s1576_s19, 1  ;;  %p133_p8 = scmp.eq.s32.totalorder %s1214_s20, 1 }
   0xd   : > { %p1382_p10 = scmp.lt.s32.totalorder %s1520_s18, 2  ;;  %s162_s29 = sand.u32 1, %s1516_s17  }
   0xe   : > { %p1605_p11 = por %p127_p7, %p34_p0  ;;  %p1609_p12 = por %p133_p8, %p40_p3 }
   0xf   : > { %s1231_s30 = sshll.u32 %s1520_s18, 11  ;;  %s1217_s5 = sshll.u32 %s162_s29, 7 }
  0x10   : > { %s1983_s27 = scalar_select %p1605_p11, 1, 0 }
  0x11   : > { %s1984_s28 = scalar_select %p1609_p12, 1, 0 }
  0x12   : > { %s1618_s8 = scalar_lea.hbm %s1975_s0, %s1231_s30  ;;  %s166_s9 = scalar_lea.vmem [#allocation2], %s1217_s5 }
  0x13   : > { %s174_s10 = sshll.u32 %s166_s9, 4  ;;  %p1622_p13 = pnand %p1382_p10, %p1594_p5  ;;  %s1626_s10 = int_to_ptr.vmem [resolvable:$true] %s174_s10 }
  0x14   : > { %s1628_s12 = scalar_lea.sflag [#allocation3], %s162_s29  ;;  %s1424_s13 = scalar_lea.hbm %s1618_s8, 2048 }
  0x15   : > { %p1425_p0 = scmp.ne.s32.totalorder %s1618_s8, %s1424_s13  ;;  %p1426_p1 = pneg %p1622_p13 }
  0x16   : > { %s1429_s22 = scalar_lea.hbm %s1975_s0, 4096  ;;  %p1430_p4 = scmp.lt.u32.totalorder %s1618_s8, %s1975_s0 }
  0x17   : > { %p1427_p2 = pnand %p1426_p1, %p1425_p0  ;;  %p1431_p5 = scmp.lt.u32.totalorder %s1429_s22, %s1424_s13 }
  0x18   : > { %p1433_p8 = scmp.lt.u32.totalorder %s1424_s13, %s1618_s8 }
  0x19   : > { %p1428_p3 = pneg %p1427_p2  ;;  %p1432_p7 = por %p1431_p5, %p1430_p4 }
  0x1b   : > { %p1434_p10 = por %p1433_p8, %p1432_p7 }
  0x1d   : > { %p1435_p9 = pnand %p1434_p10, %p1428_p3 }
  0x1f   : > { %1438 = shalt.err (!%p1435_p9)
}
  0x20   : > { %s1439_s29 = scalar_lea.vmem %s1626_s10, 2048  ;;  %s1522_s30 = smov [#allocation2]  }
  0x21   : > { %p1440_p0 = scmp.ne.s32.totalorder %s1626_s10, %s1439_s29  ;;  %s1444_s5 = sshll.u32 %s1522_s30, 4  ;;  %s1445_s5 = int_to_ptr.vmem [resolvable:$false] %s1444_s5 }
  0x22   : > { %s1446_s6 = scalar_lea.vmem %s1445_s5, 4096  ;;  %p1447_p11 = scmp.lt.s32.totalorder %s1626_s10, %s1445_s5 }
  0x23   : > { %p1442_p2 = pnand %p1440_p0, %p1426_p1  ;;  %p1448_p4 = scmp.lt.s32.totalorder %s1446_s6, %s1439_s29 }
  0x25   : > { %p1443_p12 = pneg %p1442_p2  ;;  %p1449_p5 = por %p1448_p4, %p1447_p11 }
  0x27   : > { %p1450_p7 = pnand %p1449_p5, %p1443_p12 }
  0x29   : > { %1453 = shalt.err (!%p1450_p7)
}
  0x2a   : > { %s1523_s7 = smov 256   ;;  %s1524_s9 = smov 16  }
  0x2b   : > { %1377 = dma.hbm_to_vmem [thread:$0]  (!%p1622_p13), %s1618_s8, 2048, %s1626_s10, %s1628_s12, %s1523_s7, %s1523_s7, %s1524_s9  }
  0x2c   : > { %p1221_p9 = scmp.ge.s32.totalorder %s1520_s18, 1  ;;  %p182_p1 = scmp.lt.s32.totalorder %s1520_s18, 3 }
  0x2e   : > { %p183_p3 = pnand %p1221_p9, %p182_p1 }
  0x2f   : > { %s1659_s13 = sand.u32 (!%p183_p3), 1, %s1512_s16  }
  0x30   : > { %186 = sbr.rel (%p183_p3) target bundleno = 362 (0x16a), region = 36  ;;  %s1222_s14 = sshll.u32 (!%p183_p3), %s1659_s13, 7 }
  0x31   : > { %s189_s20 = scalar_lea.sflag (!%p183_p3), [#allocation3], %s1659_s13  ;;  %s1663_s22 = scalar_lea.vmem (!%p183_p3), [#allocation2], %s1222_s14 }
  0x37   : > { %1499 = dma.done.wait (%p1598_p6), %s189_s20, 2048  }
  0x38   : > { %1501 = vsyncadd (%p1598_p6), %s189_s20, 4294965248  ;;  %v1525_v0 = vmov 0.0   ;;  %v1526_v1 = vmov 0   ;;  %v232_v2 = vld [vmem:[%s1663_s22 + $0x8] sm:$0xff]  ;;  %v234_v3 = vld [vmem:[%s1663_s22 + $0x18] sm:$0xff]  ;;  %vm247_vm0 = vcmask 523264  }
  0x39   : > { %340 = vmatprep.mubr.f32.mxu1 %v1525_v0  ;;  %767 = vmatprep.mubr.f32.mxu0 %v1525_v0  ;;  %v231_v4 = vld [vmem:[%s1663_s22] sm:$0xff]  ;;  %v260_v5 = vand.u32 4294901760, %v232_v2  ;;  %v264_v6 = vand.u32 4294901760, %v234_v3  ;;  %v233_v7 = vld [vmem:[%s1663_s22 + $0x10] sm:$0xff]  ;;  %v236_v9 = vld [vmem:[%s1663_s22 + $0x28] sm:$0xff]  ;;  %s1223_s30 = sshll.u32 %s1659_s13, 6 }
  0x3a   : > { %1423 = vset.pattern.permute.xlu1 %v1526_v1  ;;  %1422 = vset.pattern.permute.xlu0 %v1526_v1  ;;  %v262_v8 = vand.u32 4294901760, %v231_v4  ;;  %v238_v10 = vld [vmem:[%s1663_s22 + $0x38] sm:$0xff]  ;;  %v266_v11 = vand.u32 4294901760, %v233_v7  ;;  %v268_v12 = vand.u32 4294901760, %v236_v9  ;;  %v235_v14 = vld [vmem:[%s1663_s22 + $0x20] sm:$0xff]  ;;  %v237_v15 = vld [vmem:[%s1663_s22 + $0x30] sm:$0xff] }
  0x3b   : > { %v272_v13 = vand.u32 4294901760, %v238_v10  ;;  %v240_v16 = vld [vmem:[%s1663_s22 + $0x48] sm:$0xff]  ;;  %v1680_v17 = vpack.c.bf16 %v264_v6, %v260_v5  ;;  %v1682_v18 = vsub.f32 %v232_v2, %v260_v5  ;;  %v1684_v19 = vsub.f32 %v234_v3, %v264_v6  ;;  %v242_v21 = vld [vmem:[%s1663_s22 + $0x58] sm:$0xff]  ;;  %v239_v22 = vld [vmem:[%s1663_s22 + $0x40] sm:$0xff]  ;;  %s1914_s5 = scalar_lea.vmem [#allocation5], %s1223_s30  ;;  %s1233_s7 = sshll.u32 %s1576_s19, 10 }
  0x3c   : > { %v1686_v20 = vsub.f32 %v231_v4, %v262_v8  ;;  %v241_v23 = vld [vmem:[%s1663_s22 + $0x50] sm:$0xff]  ;;  %v1691_v24 = vpack.c.bf16 %v266_v11, %v262_v8  ;;  %v1693_v25 = vsub.f32 %v233_v7, %v266_v11  ;;  %v1697_v27 = vsub.f32 %v236_v9, %v268_v12  ;;  %v244_v28 = vld [vmem:[%s1663_s22 + $0x68] sm:$0xff]  ;;  %v246_v29 = vld [vmem:[%s1663_s22 + $0x78] sm:$0xff]  ;;  %s1141_s6 = sshll.u32 %s1914_s5, 4  ;;  %s1929_s20 = scalar_lea.hbm %s1979_s4, %s1233_s7  ;;  %s1923_s6 = int_to_ptr.vmem [resolvable:$true] %s1141_s6 }
  0x3d   : > { %v1695_v26 = vpack.c.bf16 %v272_v13, %v268_v12  ;;  %1235 = vmatprep.subr.bf16.mxu1 %v1680_v17  ;;  %1283 = vmatprep.subr.bf16.mxu0 %v1680_v17  ;;  %v1703_v30 = vsub.f32 %v238_v10, %v272_v13  ;;  %v270_v31 = vand.u32 4294901760, %v235_v14  ;;  %v274_v32 = vand.u32 4294901760, %v237_v15  ;;  %v243_v38 = vld [vmem:[%s1663_s22 + $0x60] sm:$0xff]  ;;  %v245_v39 = vld [vmem:[%s1663_s22 + $0x70] sm:$0xff]  ;;  %v226_v55 = vld [vmem:[%s1977_s2 + $0x18] sm:$0xff]  ;;  %s1127_s22 = scalar_lea.sflag [#allocation4], %s1659_s13 }
  0x3e   : > { %v276_v33 = vand.u32 4294901760, %v240_v16  ;;  %1237 = vmatpush1.bf16.msra.mxu1 %v1691_v24  ;;  %1285 = vmatpush1.bf16.msra.mxu0 %v1691_v24  ;;  %v280_v34 = vand.u32 4294901760, %v242_v21  ;;  %v278_v35 = vand.u32 4294901760, %v239_v22  ;;  %v282_v36 = vand.u32 4294901760, %v241_v23  ;;  %v219_v44 = vld [vmem:[%s1976_s1] sm:$0xff]  ;;  %v225_v45 = vld [vmem:[%s1977_s2 + $0x10] sm:$0xff] }
  0x3f   : > { %v284_v37 = vand.u32 4294901760, %v244_v28  ;;  %1239 = vmatprep.subr.bf16.mxu1 %v1695_v26  ;;  %1287 = vmatprep.subr.bf16.mxu0 %v1695_v26  ;;  %v1711_v40 = vpack.c.bf16 %v274_v32, %v270_v31  ;;  %v1713_v41 = vsub.f32 %v235_v14, %v270_v31  ;;  %v1715_v42 = vsub.f32 %v237_v15, %v274_v32  ;;  %v223_v46 = vld [vmem:[%s1977_s2] sm:$0xff]  ;;  %v224_v60 = vld [vmem:[%s1977_s2 + $0x8] sm:$0xff]  ;;  %s1454_s19 = scalar_lea.vmem %s1923_s6, 1024  ;;  %p1986_p11 = scmp.ne.s32.totalorder %s1983_s27, 0 }
  0x40   : > { %v288_v43 = vand.u32 4294901760, %v246_v29  ;;  %v1726_v47 = vpack.c.bf16 %v280_v34, %v276_v33  ;;  %v1728_v48 = vsub.f32 %v240_v16, %v276_v33  ;;  %v1730_v49 = vsub.f32 %v242_v21, %v280_v34  ;;  %1066 = vperm.xlu1 %1423, %v225_v45   ;;  %1056 = vperm.xlu0 %1422, %v223_v46   ;;  %v220_v2 = vld [vmem:[%s1976_s1 + $0x8] sm:$0xff]  ;;  %v227_v16 = vld [vmem:[%s1978_s3] sm:$0xff]  ;;  %v221_v46 = vld [vmem:[%s1976_s1 + $0x10] sm:$0xff]  ;;  %p1455_p6 = scmp.ne.s32.totalorder %s1923_s6, %s1454_s19  ;;  %s1527_s26 = smov [#allocation5]  }
  0x41   : > { %v1732_v50 = vpack.c.bf16 %v282_v36, %v278_v35  ;;  %v1734_v51 = vsub.f32 %v239_v22, %v278_v35  ;;  %v1736_v52 = vsub.f32 %v241_v23, %v282_v36  ;;  %v1740_v54 = vsub.f32 %v244_v28, %v284_v37  ;;  %v228_v11 = vld [vmem:[%s1978_s3 + $0x8] sm:$0xff]  ;;  %s1458_s8 = sshll.u32 %s1527_s26, 4  ;;  %s1459_s8 = int_to_ptr.vmem [resolvable:$false] %s1458_s8 }
  0x42   : > { %v1738_v53 = vpack.c.bf16 %v288_v43, %v284_v37  ;;  %1241 = vmatpush1.bf16.msra.mxu1 %v1711_v40  ;;  %1289 = vmatpush1.bf16.msra.mxu0 %v1711_v40  ;;  %v1747_v56 = vsub.f32 %v246_v29, %v288_v43  ;;  %v286_v57 = vand.u32 4294901760, %v243_v38  ;;  %v290_v58 = vand.u32 4294901760, %v245_v39  ;;  %p1456_p12 = pnand %p1455_p6, %p1986_p11  ;;  %s1460_s10 = scalar_lea.vmem %s1459_s8, 2048 }
  0x43   : > { %v249_v59 = vsel %vm247_vm0, %v219_v44, 0  ;;  %1243 = vmatprep.subr.bf16.mxu1 %v1726_v47  ;;  %1291 = vmatprep.subr.bf16.mxu0 %v1726_v47  ;;  %v387_v62 = vand.u32 4294901760, %v1682_v18  ;;  %v399_v63 = vand.u32 4294901760, %v1684_v19  ;;  %v393_v1 = vand.u32 4294901760, %v1686_v20  ;;  %p1461_p8 = scmp.lt.s32.totalorder %s1923_s6, %s1459_s8  ;;  %p1462_p10 = scmp.lt.s32.totalorder %s1460_s10, %s1454_s19 }
  0x44   : > { %v1755_v61 = vand.u32 4294901760, %v249_v59  ;;  %v1763_v3 = vpack.c.bf16 %v290_v58, %v286_v57  ;;  %v1765_v4 = vsub.f32 %v243_v38, %v286_v57  ;;  %v1767_v5 = vsub.f32 %v245_v39, %v290_v58  ;;  %1071 = vperm.xlu1 %1423, %v226_v55   ;;  %1061 = vperm.xlu0 %1422, %v224_v60   ;;  %v230_v38 = vld [vmem:[%s1978_s3 + $0x18] sm:$0xff]  ;;  %p1457_p13 = pneg %p1456_p12 }
  0x45   : > { %v405_v6 = vand.u32 4294901760, %v1693_v25  ;;  %v388_v8 = vsub.f32 %v1682_v18, %v387_v62  ;;  %v400_v9 = vsub.f32 %v1684_v19, %v399_v63  ;;  %v1298_v10 = vpack.c.bf16 %v399_v63, %v387_v62  ;;  %p1463_p0 = por %p1462_p10, %p1461_p8 }
  0x46   : > { %v1771_v7 = vsub.f32 %v249_v59, %v1755_v61  ;;  %1245 = vmatpush1.bf16.msra.mxu1 %v1732_v50  ;;  %1293 = vmatpush1.bf16.msra.mxu0 %v1732_v50  ;;  %v394_v12 = vsub.f32 %v1686_v20, %v393_v1  ;;  %v252_v15 = vsel %vm247_vm0, %v220_v2, 0  ;;  %v411_v32 = vand.u32 4294901760, %v1697_v27 }
  0x47   : > { %v406_v13 = vsub.f32 %v1693_v25, %v405_v6  ;;  %v1300_v14 = vpack.c.bf16 %v405_v6, %v393_v1  ;;  %1247 = vmatprep.subr.bf16.mxu1 %v1738_v53  ;;  %1295 = vmatprep.subr.bf16.mxu0 %v1738_v53  ;;  %v389_v22 = vand.u32 4294901760, %v388_v8  ;;  %v401_v23 = vand.u32 4294901760, %v400_v9  ;;  %p1464_p2 = pnand %p1463_p0, %p1457_p13 }
  0x48   : > { %v343_v21 = vand.u32 4294901760, %v1771_v7  ;;  %v1789_v28 = vand.u32 4294901760, %v252_v15  ;;  %v395_v29 = vand.u32 4294901760, %v394_v12  ;;  %v423_v33 = vand.u32 4294901760, %v1703_v30  ;;  %1089 = vperm.xlu1 %1423, %v228_v11   ;;  %1084 = vperm.xlu0 %1422, %v227_v16  }
  0x49   : > { %v407_v31 = vand.u32 4294901760, %v406_v13  ;;  %v1250_v35 = vpack.c.bf16 %v401_v23, %v389_v22  ;;  %v417_v37 = vand.u32 4294901760, %v1713_v41  ;;  %v412_v43 = vsub.f32 %v1697_v27, %v411_v32 }
  0x4a   : > { %v344_v34 = vsub.f32 %v1771_v7, %v343_v21  ;;  %v1795_v36 = vsub.f32 %v252_v15, %v1789_v28  ;;  %1249 = vmatpush1.bf16.msra.mxu1 %v1763_v3  ;;  %1297 = vmatpush1.bf16.msra.mxu0 %v1763_v3  ;;  %v424_v44 = vsub.f32 %v1703_v30, %v423_v33  ;;  %v429_v45 = vand.u32 4294901760, %v1715_v42 }
  0x4b   : > { %v1252_v39 = vpack.c.bf16 %v407_v31, %v395_v29  ;;  %1251 = vmatprep.subr.bf16.mxu1 %v1250_v35  ;;  %1299 = vmatprep.subr.bf16.mxu0 %v1298_v10  ;;  %v1302_v58 = vpack.c.bf16 %v423_v33, %v411_v32  ;;  %v418_v59 = vsub.f32 %v1713_v41, %v417_v37  ;;  %v413_v60 = vand.u32 4294901760, %v412_v43  ;;  %v222_v10 = vld [vmem:[%s1976_s1 + $0x18] sm:$0xff] }
  0x4c   : > { %v345_v55 = vand.u32 4294901760, %v344_v34  ;;  %v354_v57 = vand.u32 4294901760, %v1795_v36  ;;  %v425_v62 = vand.u32 4294901760, %v424_v44  ;;  %v430_v63 = vsub.f32 %v1715_v42, %v429_v45  ;;  %1099 = vperm.xlu1 %1423, %v230_v38   ;;  %v229_v38 = vld [vmem:[%s1978_s3 + $0x10] sm:$0xff] }
  0x4d   : > { %v1304_v1 = vpack.c.bf16 %v429_v45, %v417_v37  ;;  %771 = vmatmul.mubr.f32.vlgmr.msra.gmra.mrb[0].mxu0 %v343_v21  ;;  %v419_v6 = vand.u32 4294901760, %v418_v59  ;;  %v255_v8 = vsel %vm247_vm0, %v221_v46, 0  ;;  %v435_v9 = vand.u32 4294901760, %v1728_v48  ;;  %1094 = vperm.xlu0 %1422, %v229_v38  }
  0x4e   : > { %346 = vmatmul.mubr.f32.vlgmr.msra.gmra.mrb[0].mxu1 %v345_v55  ;;  %v355_v2 = vsub.f32 %v1795_v36, %v354_v57  ;;  %1301 = vmatpush1.bf16.msra.mxu0 %v1300_v14  ;;  %v1254_v11 = vpack.c.bf16 %v425_v62, %v413_v60  ;;  %v431_v12 = vand.u32 4294901760, %v430_v63  ;;  %v1818_v13 = vand.u32 4294901760, %v255_v8 }
  0x4f   : > { %1253 = vmatpush1.bf16.msra.mxu1 %v1252_v39  ;;  %v447_v15 = vand.u32 4294901760, %v1730_v49  ;;  %351 = vmatprep.mubr.f32.mxu1 %v1525_v0  ;;  %v436_v21 = vsub.f32 %v1728_v48, %v435_v9  ;;  %v441_v22 = vand.u32 4294901760, %v1734_v51  ;;  %v453_v23 = vand.u32 4294901760, %v1736_v52 }
  0x50   : > { %776 = vmatprep.mubr.f32.mxu0 %v1525_v0  ;;  %v356_v16 = vand.u32 4294901760, %v355_v2  ;;  %1255 = vmatprep.subr.bf16.mxu1 %v1254_v11  ;;  %v1256_v14 = vpack.c.bf16 %v431_v12, %v419_v6  ;;  %v1827_v29 = vsub.f32 %v255_v8, %v1818_v13  ;;  %v258_v32 = vsel %vm247_vm0, %v222_v10, 0 }
  0x51   : > { %1303 = vmatprep.subr.bf16.mxu0 %v1302_v58  ;;  %v448_v31 = vsub.f32 %v1730_v49, %v447_v15  ;;  %780 = vmatmul.mubr.f32.gmra.mrb[2].mxu0 %v354_v57  ;;  %v437_v33 = vand.u32 4294901760, %v436_v21  ;;  %v1306_v34 = vpack.c.bf16 %v447_v15, %v435_v9  ;;  %v442_v35 = vsub.f32 %v1734_v51, %v441_v22 }
  0x52   : > { %357 = vmatmul.mubr.f32.gmra.mrb[2].mxu1 %v356_v16  ;;  %v454_v37 = vsub.f32 %v1736_v52, %v453_v23  ;;  %1305 = vmatpush1.bf16.msra.mxu0 %v1304_v1  ;;  %v365_v39 = vand.u32 4294901760, %v1827_v29  ;;  %v1308_v44 = vpack.c.bf16 %v453_v23, %v441_v22  ;;  %v1837_v45 = vand.u32 4294901760, %v258_v32 }
  0x53   : > { %1257 = vmatpush1.bf16.msra.mxu1 %v1256_v14  ;;  %v449_v43 = vand.u32 4294901760, %v448_v31  ;;  %362 = vmatprep.mubr.f32.mxu1 %v1525_v0  ;;  %v443_v46 = vand.u32 4294901760, %v442_v35  ;;  %v459_v57 = vand.u32 4294901760, %v1740_v54  ;;  %v471_v58 = vand.u32 4294901760, %v1747_v56 }
  0x54   : > { %785 = vmatprep.mubr.f32.mxu0 %v1525_v0  ;;  %v455_v55 = vand.u32 4294901760, %v454_v37  ;;  %v366_v59 = vsub.f32 %v1827_v29, %v365_v39  ;;  %1307 = vmatprep.subr.bf16.mxu0 %v1306_v34  ;;  %v1845_v62 = vsub.f32 %v258_v32, %v1837_v45  ;;  %v465_v63 = vand.u32 4294901760, %v1765_v4 }
  0x55   : > { %v1258_v60 = vpack.c.bf16 %v449_v43, %v437_v33  ;;  %789 = vmatmul.mubr.f32.gmra.mrb[4].mxu0 %v365_v39  ;;  %v460_v2 = vsub.f32 %v1740_v54, %v459_v57  ;;  %v472_v6 = vsub.f32 %v1747_v56, %v471_v58  ;;  %v1310_v8 = vpack.c.bf16 %v471_v58, %v459_v57 }
  0x56   : > { %v1260_v1 = vpack.c.bf16 %v455_v55, %v443_v46  ;;  %v367_v9 = vand.u32 4294901760, %v366_v59  ;;  %1309 = vmatpush1.bf16.msra.mxu0 %v1308_v44  ;;  %v376_v10 = vand.u32 4294901760, %v1845_v62  ;;  %v466_v11 = vsub.f32 %v1765_v4, %v465_v63  ;;  %794 = vmatprep.mubr.f32.mxu0 %v1525_v0 }
  0x57   : > { %1259 = vmatprep.subr.bf16.mxu1 %v1258_v60  ;;  %v477_v12 = vand.u32 4294901760, %v1767_v5  ;;  %v461_v15 = vand.u32 4294901760, %v460_v2  ;;  %v473_v16 = vand.u32 4294901760, %v472_v6  ;;  %1311 = vmatprep.subr.bf16.mxu0 %v1310_v8  ;;  %v1266_v34 = vpack.c.bf16 %v1684_v19, %v1682_v18 }
  0x58   : > { %1261 = vmatpush1.bf16.msra.mxu1 %v1260_v1  ;;  %v377_v21 = vsub.f32 %v1845_v62, %v376_v10  ;;  %v467_v22 = vand.u32 4294901760, %v466_v11  ;;  %v1268_v37 = vpack.c.bf16 %v1693_v25, %v1686_v20  ;;  %v1270_v18 = vpack.c.bf16 %v1703_v30, %v1697_v27 }
  0x59   : > { %368 = vmatmul.mubr.f32.gmra.mrb[4].mxu1 %v367_v9  ;;  %v478_v23 = vsub.f32 %v1767_v5, %v477_v12  ;;  %v1312_v14 = vpack.c.bf16 %v477_v12, %v465_v63  ;;  %v1262_v31 = vpack.c.bf16 %v473_v16, %v461_v15  ;;  %798 = vmatmul.mubr.f32.gmra.mrb[6].mxu0 %v376_v10 }
  0x5a   : > { %373 = vmatprep.mubr.f32.mxu1 %v1525_v0  ;;  %v378_v32 = vand.u32 4294901760, %v377_v21  ;;  %916 = vmatprep.mubr.f32.mxu0 %v1525_v0  ;;  %v1274_v19 = vpack.c.bf16 %v1730_v49, %v1728_v48  ;;  %v1276_v20 = vpack.c.bf16 %v1736_v52, %v1734_v51  ;;  %v1280_v25 = vpack.c.bf16 %v1767_v5, %v1765_v4 }
  0x5b   : > { %v479_v33 = vand.u32 4294901760, %v478_v23  ;;  %1313 = vmatpush1.bf16.msra.mxu0 %v1312_v14  ;;  %1263 = vmatprep.subr.bf16.mxu1 %v1262_v31 }
  0x5c   : > { %1315 = vmatprep.subr.bf16.mxu0 %v1680_v17  ;;  %v1272_v17 = vpack.c.bf16 %v1715_v42, %v1713_v41 }
  0x5d   : > { %379 = vmatmul.mubr.f32.gmra.mrb[6].mxu1 %v378_v32  ;;  %v1264_v35 = vpack.c.bf16 %v479_v33, %v467_v22 }
  0x5e   : > { %529 = vmatprep.mubr.f32.mxu1 %v1525_v0  ;;  %918 = vmatmul.mubr.f32.vlgmr.msra.gmra.mrb[0].mxu0 %v1755_v61 }
  0x5f   : > { %1265 = vmatpush1.bf16.msra.mxu1 %v1264_v35  ;;  %1317 = vmatpush1.bf16.msra.mxu0 %v1691_v24  ;;  %v1278_v24 = vpack.c.bf16 %v1747_v56, %v1740_v54 }
  0x60   : > { %1267 = vmatprep.subr.bf16.mxu1 %v1266_v34  ;;  %923 = vmatprep.mubr.f32.mxu0 %v1525_v0 }
  0x61   : > { %1319 = vmatprep.subr.bf16.mxu0 %v1695_v26 }
  0x62   : > { %531 = vmatmul.mubr.f32.vlgmr.msra.gmra.mrb[0].mxu1 %v1755_v61  ;;  %925 = vmatmul.mubr.f32.gmra.mrb[2].mxu0 %v1789_v28 }
  0x63   : > { %1269 = vmatpush1.bf16.msra.mxu1 %v1268_v37  ;;  %536 = vmatprep.mubr.f32.mxu1 %v1525_v0 }
  0x64   : > { %1271 = vmatprep.subr.bf16.mxu1 %v1270_v18  ;;  %1321 = vmatpush1.bf16.msra.mxu0 %v1711_v40 }
  0x65   : > { %930 = vmatprep.mubr.f32.mxu0 %v1525_v0  ;;  %1323 = vmatprep.subr.bf16.mxu0 %v1726_v47 }
  0x66   : > { %538 = vmatmul.mubr.f32.gmra.mrb[2].mxu1 %v1789_v28  ;;  %932 = vmatmul.mubr.f32.gmra.mrb[4].mxu0 %v1818_v13 }
  0x67   : > { %1273 = vmatpush1.bf16.msra.mxu1 %v1272_v17  ;;  %543 = vmatprep.mubr.f32.mxu1 %v1525_v0 }
  0x68   : > { %1275 = vmatprep.subr.bf16.mxu1 %v1274_v19  ;;  %1325 = vmatpush1.bf16.msra.mxu0 %v1732_v50 }
  0x69   : > { %937 = vmatprep.mubr.f32.mxu0 %v1525_v0  ;;  %1327 = vmatprep.subr.bf16.mxu0 %v1738_v53 }
  0x6a   : > { %545 = vmatmul.mubr.f32.gmra.mrb[4].mxu1 %v1818_v13  ;;  %939 = vmatmul.mubr.f32.gmra.mrb[6].mxu0 %v1837_v45 }
  0x6b   : > { %1277 = vmatpush1.bf16.msra.mxu1 %v1276_v20  ;;  %550 = vmatprep.mubr.f32.mxu1 %v1525_v0 }
  0x6c   : > { %1279 = vmatprep.subr.bf16.mxu1 %v1278_v24  ;;  %1329 = vmatpush1.bf16.msra.mxu0 %v1763_v3 }
  0x6d   : > { %1025 = vmatprep.mubr.f32.mxu0 %v1525_v0 }
  0x6e   : > { %552 = vmatmul.mubr.f32.gmra.mrb[6].mxu1 %v1837_v45 }
  0x6f   : > { %1281 = vmatpush1.bf16.msra.mxu1 %v1280_v25  ;;  %654 = vmatprep.mubr.f32.mxu1 %v1525_v0 }
  0x70   : > { %1027 = vmatmul.mubr.f32.vlgmr.msra.gmra.mrb[0].mxu0 %v1755_v61 }
  0x71   : > { %1032 = vmatprep.mubr.f32.mxu0 %v1525_v0 }
  0x72   : > { %657 = vmatmul.mubr.f32.vlgmr.msra.gmra.mrb[0].mxu1 %v1771_v7 }
  0x73   : > { %662 = vmatprep.mubr.f32.mxu1 %v1525_v0 }
  0x74   : > { %1034 = vmatmul.mubr.f32.gmra.mrb[2].mxu0 %v1789_v28 }
  0x75   : > { %1039 = vmatprep.mubr.f32.mxu0 %v1525_v0 }
  0x76   : > { %665 = vmatmul.mubr.f32.gmra.mrb[2].mxu1 %v1795_v36 }
  0x77   : > { %670 = vmatprep.mubr.f32.mxu1 %v1525_v0 }
  0x78   : > { %1041 = vmatmul.mubr.f32.gmra.mrb[4].mxu0 %v1818_v13 }
  0x79   : > { %1046 = vmatprep.mubr.f32.mxu0 %v1525_v0 }
  0x7a   : > { %673 = vmatmul.mubr.f32.gmra.mrb[4].mxu1 %v1827_v29 }
  0x7b   : > { %678 = vmatprep.mubr.f32.mxu1 %v1525_v0 }
  0x7c   : > { %1048 = vmatmul.mubr.f32.gmra.mrb[6].mxu0 %v1837_v45 }
  0x7e   : > { %681 = vmatmul.mubr.f32.gmra.mrb[6].mxu1 %v1845_v62 }
  0xbf   : > { %v1057_v26 = vpop.permute.xlu0 %1056  ;;  %v1067_v27 = vpop.permute.xlu1 %1066 }
  0xc3   : > { %v1062_v30 = vpop.permute.xlu0 %1061  ;;  %v1072_v49 = vpop.permute.xlu1 %1071 }
  0xc7   : > { %v1085_v0 = vpop.permute.xlu0 %1084  ;;  %v1090_v38 = vpop.permute.xlu1 %1089 }
  0xcb   : > { %v1100_v22 = vpop.permute.xlu1 %1099 }
  0xcc   : > { %v1095_v2 = vpop.permute.xlu0 %1094 }
 0x143   : > { %v1028_v40 = vpop.f32.mrb[0].mxu0 }
 0x144   : > { %v1030_v41 = vpop.f32.mrb[1].mxu0 }
 0x145   : > { %v658_v42 = vpop.f32.mrb[0].mxu1 }
 0x146   : > { %v1330_v47 = vadd.f32 %v1028_v40, %v658_v42  ;;  %v660_v48 = vpop.f32.mrb[1].mxu1 }
 0x147   : > { %v1331_v50 = vadd.f32 %v1030_v41, %v660_v48  ;;  %v1035_v51 = vpop.f32.mrb[2].mxu0 }
 0x148   : > { %v1074_v52 = vmul.f32 %v1330_v47, %v1057_v26  ;;  %v1037_v53 = vpop.f32.mrb[3].mxu0 }
 0x149   : > { %v1075_v54 = vmul.f32 %v1331_v50, %v1057_v26  ;;  %v666_v56 = vpop.f32.mrb[2].mxu1 }
 0x14a   : > { %v1102_v61 = vadd.f32 %v1085_v0, %v1074_v52  ;;  %v1332_v3 = vadd.f32 %v1035_v51, %v666_v56  ;;  %v668_v4 = vpop.f32.mrb[3].mxu1 }
 0x14b   : > { %v1103_v5 = vadd.f32 %v1085_v0, %v1075_v54  ;;  %v1333_v7 = vadd.f32 %v1037_v53, %v668_v4  ;;  %v1042_v28 = vpop.f32.mrb[4].mxu0 }
 0x14c   : > { %v1110_v36 = vmax.f32 %v1102_v61, 0.0  ;;  %v1076_v13 = vmul.f32 %v1332_v3, %v1062_v30  ;;  %v1044_v29 = vpop.f32.mrb[5].mxu0 }
 0x14d   : > { %v1111_v39 = vmax.f32 %v1103_v5, 0.0  ;;  %v1077_v43 = vmul.f32 %v1333_v7, %v1062_v30  ;;  %v674_v44 = vpop.f32.mrb[4].mxu1 }
 0x14e   : > { %1118 = vst [vmem:[%s1914_s5] sm:$0xff] %v1110_v36  ;;  %v1104_v45 = vadd.f32 %v1090_v38, %v1076_v13  ;;  %v1334_v46 = vadd.f32 %v1042_v28, %v674_v44  ;;  %v676_v55 = vpop.f32.mrb[5].mxu1 }
 0x14f   : > { %1119 = vst [vmem:[%s1914_s5 + $0x8] sm:$0xff] %v1111_v39  ;;  %v1105_v57 = vadd.f32 %v1090_v38, %v1077_v43  ;;  %v1335_v58 = vadd.f32 %v1044_v29, %v676_v55  ;;  %v1049_v59 = vpop.f32.mrb[6].mxu0 }
 0x150   : > { %v1112_v60 = vmax.f32 %v1104_v45, 0.0  ;;  %v1078_v62 = vmul.f32 %v1334_v46, %v1067_v27  ;;  %v1051_v63 = vpop.f32.mrb[7].mxu0 }
 0x151   : > { %v1113_v1 = vmax.f32 %v1105_v57, 0.0  ;;  %v1079_v6 = vmul.f32 %v1335_v58, %v1067_v27  ;;  %v682_v8 = vpop.f32.mrb[6].mxu1 }
 0x152   : > { %1120 = vst [vmem:[%s1914_s5 + $0x10] sm:$0xff] %v1112_v60  ;;  %v1106_v9 = vadd.f32 %v1095_v2, %v1078_v62  ;;  %v1336_v10 = vadd.f32 %v1049_v59, %v682_v8  ;;  %v684_v11 = vpop.f32.mrb[7].mxu1 }
 0x153   : > { %1121 = vst [vmem:[%s1914_s5 + $0x18] sm:$0xff] %v1113_v1  ;;  %v1107_v12 = vadd.f32 %v1095_v2, %v1079_v6  ;;  %v1337_v15 = vadd.f32 %v1051_v63, %v684_v11 }
 0x154   : > { %v1114_v16 = vmax.f32 %v1106_v9, 0.0  ;;  %v1080_v21 = vmul.f32 %v1336_v10, %v1072_v49 }
 0x155   : > { %v1115_v23 = vmax.f32 %v1107_v12, 0.0  ;;  %v1081_v14 = vmul.f32 %v1337_v15, %v1072_v49 }
 0x156   : > { %1122 = vst [vmem:[%s1914_s5 + $0x20] sm:$0xff] %v1114_v16  ;;  %v1108_v31 = vadd.f32 %v1100_v22, %v1080_v21 }
 0x157   : > { %1123 = vst [vmem:[%s1914_s5 + $0x28] sm:$0xff] %v1115_v23  ;;  %v1109_v32 = vadd.f32 %v1100_v22, %v1081_v14 }
 0x158   : > { %v1116_v33 = vmax.f32 %v1108_v31, 0.0 }
 0x159   : > { %v1117_v34 = vmax.f32 %v1109_v32, 0.0 }
 0x15a   : > { %1124 = vst [vmem:[%s1914_s5 + $0x30] sm:$0xff] %v1116_v33 }
 0x15b   : > { %1125 = vst [vmem:[%s1914_s5 + $0x38] sm:$0xff] %v1117_v34 }
 0x15c   : > { %1467 = shalt.err (!%p1464_p2)
}
 0x15d   : > { %s1468_s11 = scalar_lea.hbm %s1929_s20, 1024  ;;  %s1472_s25 = scalar_lea.hbm %s1979_s4, 2048 }
 0x15e   : > { %p1469_p4 = scmp.ne.s32.totalorder %s1929_s20, %s1468_s11  ;;  %p1473_p9 = scmp.lt.u32.totalorder %s1929_s20, %s1979_s4 }
 0x15f   : > { %p1474_p1 = scmp.lt.u32.totalorder %s1472_s25, %s1468_s11  ;;  %p1476_p6 = scmp.lt.u32.totalorder %s1468_s11, %s1929_s20 }
 0x160   : > { %p1470_p5 = pnand %p1469_p4, %p1986_p11 }
 0x161   : > { %p1475_p3 = por %p1474_p1, %p1473_p9 }
 0x162   : > { %p1471_p7 = pneg %p1470_p5 }
 0x163   : > { %p1477_p12 = por %p1476_p6, %p1475_p3 }
 0x165   : > { %p1478_p13 = pnand %p1477_p12, %p1471_p7 }
 0x167   : > { %1481 = shalt.err (!%p1478_p13)
}
 0x168   : > { %s1528_s5 = smov 256   ;;  %s1529_s7 = smov 16  }
 0x169   : > { %1372 = dma.vmem_to_hbm [thread:$0]  (%p1986_p11), %s1923_s6, 1024, %s1929_s20, %s1127_s22, %s1528_s5, %s1528_s5, %s1529_s7  }
 0x16a PF: > { %s1156_s9 = sand.u32 1, %s1508_s15   ;;  %p1987_p8 = scmp.ne.s32.totalorder %s1984_s28, 0 }
 0x16b   : > { %p1988_p10 = scmp.ge.s32.totalorder %s1520_s18, 2  ;;  %s1157_s14 = scalar_lea.sflag [#allocation4], %s1156_s9 }
 0x16d   : > { %p1379_p0 = pnand %p1988_p10, %p1987_p8 }
 0x16f   : > { %1503 = dma.done.wait (!%p1379_p0), %s1157_s14, 1024  }
 0x170   : > { %1505 = vsyncadd (!%p1379_p0), %s1157_s14, 4294966272  ;;  %p17_p2 = scmp.ge.s32.totalorder %s1580_s21, 4   ;;  %s1989_s15 = smov %s1512_s16 }
 0x171   : > { %s1990_s16 = smov %s1516_s17  ;;  %s1991_s17 = smov %s1592_s24 }
 0x172   : > { %s1992_s18 = smov %s1580_s21  ;;  %19 = sbr.rel (!%p17_p2) target bundleno = 5 (0x5), region = 81 }
 0x179   :  { %1162 = vsyncpa [#allocation3], 1 }
 0x17a   :  { %1164 = vsyncpa [#allocation3 + $0x1], 1 }
 0x17b   :  { %1165 = vsyncpa [#allocation4], 1 }
 0x17c   :  { %1167 = vsyncpa [#allocation4 + $0x1], 1 }

</bundles_post_ra>
